<compile_context>
chip_gen: v6e
topology: v6e:2x2x1
jax: 0.10.0
libtpu: 0.0.40
codegen_flags: <defaults>
</compile_context>

<pallas_src>
import functools

import jax
import jax.numpy as jnp
from jax.experimental import pallas as pl
from jax.experimental.pallas import tpu as pltpu


def _round_up(x: int, m: int) -> int:
    return (x + m - 1) // m * m


def _lane_align() -> int:
    """256-aligned lane tiles for v6e/v7x (2x256x256 MXU); 128 for v5e (4x128x128)."""
    try:
        kind = jax.devices()[0].device_kind.lower()
    except Exception:
        return 128
    if any(tag in kind for tag in ("v6", "v7", "tpu7", "7x")):
        return 256
    return 128


def mlp_kernel(x_ref, w1_ref, b1_ref, w2_ref, b2_ref, o_ref):
    # fc1: [TB, Ip](bf16) @ [Ip, Hp](bf16) -> f32 accumulator on the MXU.
    h = jnp.dot(x_ref[...], w1_ref[...], preferred_element_type=jnp.float32)
    # Bias + ReLU epilogue in f32 on the VPU (no bf16-elementwise emulation on v5e).
    h = jnp.maximum(h + b1_ref[...], 0.0)
    # Dropout: inference mode -> identity (matches nn.Dropout under model.eval()).
    # TODO(synk): training-mode dropout would need pltpu.prng_seed/prng_random_bits + scaled mask.
    # fc2: [TB, Hp](bf16) @ [Hp, Cp](bf16) -> f32 accumulator on the MXU.
    out = jnp.dot(h.astype(w2_ref.dtype), w2_ref[...], preferred_element_type=jnp.float32)
    o_ref[...] = (out + b2_ref[...]).astype(o_ref.dtype)


def prepare_mlp_params(w1, b1, w2, b2, *, lane_align=None, mxu_dtype=jnp.bfloat16):
    """One-time packing of PyTorch-layout Linear params into MXU-ready operands.

    w1: [H, I], b1: [H], w2: [C, H], b2: [C] ->
      w1p: [Ip, Hp] bf16, w2p: [Hp, Cp] bf16, b1p: [1, Hp] f32, b2p: [1, Cp] f32.
    Zero padding keeps the math exact: padded x cols hit zero W1 rows, padded hidden
    cols give ReLU(0)=0 against zero W2 rows, padded batch/class entries are sliced off.
    """
    if lane_align is None:
        lane_align = _lane_align()
    H, I = w1.shape
    C, H2 = w2.shape
    assert H2 == H and b1.shape == (H,) and b2.shape == (C,)
    Ip, Hp, Cp = (_round_up(d, lane_align) for d in (I, H, C))
    w1p = jnp.zeros((Ip, Hp), mxu_dtype).at[:I, :H].set(w1.T.astype(mxu_dtype))
    w2p = jnp.zeros((Hp, Cp), mxu_dtype).at[:H, :C].set(w2.T.astype(mxu_dtype))
    b1p = jnp.zeros((1, Hp), jnp.float32).at[0, :H].set(b1.astype(jnp.float32))
    b2p = jnp.zeros((1, Cp), jnp.float32).at[0, :C].set(b2.astype(jnp.float32))
    return {"w1p": w1p, "b1p": b1p, "w2p": w2p, "b2p": b2p}


@functools.partial(jax.jit, static_argnames=("num_classes", "tile_b"))
def mlp_forward(x, w1p, b1p, w2p, b2p, *, num_classes, tile_b=512):
    """x: [B, I] f32; w*/b* from prepare_mlp_params. Returns [B, num_classes]."""
    B, I = x.shape
    Ip, Hp = w1p.shape
    Cp = w2p.shape[1]
    mxu_dtype = w1p.dtype

    # Batch tiling: biggest tile up to tile_b (fewer ~0.35us grid steps, saturated MXU),
    # 16-row granularity (bf16 sublane packing of the x tile), and >= 2 grid steps when
    # the batch permits so the parallel axis shards across both v7x TensorCores.
    TB = min(tile_b, _round_up(B, 16))
    if B > 16 and pl.cdiv(B, TB) < 2:
        TB = _round_up(pl.cdiv(B, 2), 16)
    Bp = _round_up(B, TB)
    grid = (Bp // TB,)

    # Only the activation pad/cast stays in the hot path (weights are pre-packed).
    xp = jnp.zeros((Bp, Ip), mxu_dtype).at[:B, :I].set(x.astype(mxu_dtype))

    itm = jnp.dtype(mxu_dtype).itemsize
    # VMEM footprint: double-buffered x/out tiles, single-buffered resident weights,
    # f32 h intermediate / epilogue temps; +25% headroom over the scoped default.
    # TODO(synk): if resident weights ever exceed ~40 MiB (e.g. I=H=4096 on v7x's 64 MiB
    # VMEM), add a K-reduction grid axis over Ip (f32 acc scratch + pl.when init) and/or
    # tile Cp for fc2 instead of keeping both weights fully resident.
    footprint = (2 * TB * Ip * itm          # x tiles (double buffered)
                 + 2 * TB * Cp * 4          # out tiles (f32, double buffered)
                 + Ip * Hp * itm            # W1 (single buffer)
                 + Hp * Cp * itm            # W2 (single buffer)
                 + (Hp + Cp) * 4            # biases
                 + TB * Hp * 4 + TB * Cp * 4)  # h / epilogue temporaries
    vmem_limit = min(max(int(footprint * 1.25) + (2 << 20), 16 << 20), 64 << 20)

    flops = 2 * Bp * (Ip * Hp + Hp * Cp)
    bytes_accessed = (xp.size * itm + w1p.size * itm + w2p.size * itm
                      + b1p.size * 4 + b2p.size * 4 + Bp * Cp * 4)

    resident = dict(pipeline_mode=pl.Buffered(1))  # grid-invariant: 1 buffer, not 2

    out_padded = pl.pallas_call(
        mlp_kernel,
        out_shape=jax.ShapeDtypeStruct((Bp, Cp), jnp.float32),
        grid_spec=pltpu.PrefetchScalarGridSpec(
            num_scalar_prefetch=0,
            grid=grid,
            in_specs=[
                pl.BlockSpec((TB, Ip), lambda i: (i, 0)),              # x: streamed tiles
                pl.BlockSpec((Ip, Hp), lambda i: (0, 0), **resident),  # W1: VMEM-resident
                pl.BlockSpec((1, Hp), lambda i: (0, 0), **resident),   # b1: resident
                pl.BlockSpec((Hp, Cp), lambda i: (0, 0), **resident),  # W2: resident
                pl.BlockSpec((1, Cp), lambda i: (0, 0), **resident),   # b2: resident
            ],
            out_specs=pl.BlockSpec((TB, Cp), lambda i: (i, 0)),
        ),
        compiler_params=pltpu.CompilerParams(
            dimension_semantics=("parallel",),
            vmem_limit_bytes=vmem_limit),
        cost_estimate=pl.CostEstimate(flops=flops, transcendentals=0,
                                      bytes_accessed=bytes_accessed),
    )(xp, w1p, b1p, w2p, b2p)

    return out_padded[:B, :num_classes].astype(x.dtype)


if __name__ == "__main__":
    # Small, module-consistent shapes; batch chosen so the grid has >= 2 steps.
    batch = 64
    input_size = 32
    hidden_size = 64
    num_classes = 16
    dropout_rate = 0.5  # unused at inference (identity)

    key = jax.random.PRNGKey(0)
    kx, kw1, kb1, kw2, kb2 = jax.random.split(key, 5)

    x = jax.random.normal(kx, (batch, input_size), dtype=jnp.float32)

    # Deterministic init mimicking nn.Linear's U(-1/sqrt(in), 1/sqrt(in)),
    # in PyTorch [out_features, in_features] layout.
    bound1 = 1.0 / jnp.sqrt(input_size)
    w1 = jax.random.uniform(kw1, (hidden_size, input_size), jnp.float32, -bound1, bound1)
    b1 = jax.random.uniform(kb1, (hidden_size,), jnp.float32, -bound1, bound1)
    bound2 = 1.0 / jnp.sqrt(hidden_size)
    w2 = jax.random.uniform(kw2, (num_classes, hidden_size), jnp.float32, -bound2, bound2)
    b2 = jax.random.uniform(kb2, (num_classes,), jnp.float32, -bound2, bound2)

    # Weight packing happens ONCE here (init time), not in the per-call hot path.
    params = prepare_mlp_params(w1, b1, w2, b2)
    out = mlp_forward(x, params["w1p"], params["b1p"], params["w2p"], params["b2p"],
                      num_classes=num_classes)
    jax.block_until_ready(out)

    # Pure-f32 JAX reference (dropout is identity in eval mode). Kernel uses bf16
    # MXU operands with f32 accumulation -> bf16-level tolerance.
    ref = jnp.maximum(x @ w1.T + b1[None, :], 0.0) @ w2.T + b2[None, :]
    assert out.shape == (batch, num_classes)
    assert jnp.allclose(out, ref, atol=3e-2, rtol=3e-2), \
        float(jnp.max(jnp.abs(out - ref)))

    print("KERNEL_OK")
</pallas_src>

<mosaic_0001>
module attributes {stable_mosaic.version = 11 : i64} {
  func.func @mlp_kernel(%arg0: i32, %arg1: memref<32x128xbf16, #tpu.memory_space<vmem>>, %arg2: memref<128x128xbf16, #tpu.memory_space<vmem>>, %arg3: memref<1x128xf32, #tpu.memory_space<vmem>>, %arg4: memref<128x128xbf16, #tpu.memory_space<vmem>>, %arg5: memref<1x128xf32, #tpu.memory_space<vmem>>, %arg6: memref<32x128xf32, #tpu.memory_space<vmem>>) attributes {dimension_semantics = [#tpu.dimension_semantics<parallel>], iteration_bounds = array<i64: 2>, scalar_prefetch = 0 : i64, scratch_operands = 0 : i64, tpu.core_type = #tpu.core_type<tc>, window_params = [{transform_indices = @transform_0, window_bounds = array<i64: 32, 128>}, {pipeline_mode = #tpu.pipeline_mode<synchronous>, transform_indices = @transform_1, window_bounds = array<i64: 128, 128>}, {pipeline_mode = #tpu.pipeline_mode<synchronous>, transform_indices = @transform_2, window_bounds = array<i64: 1, 128>}, {pipeline_mode = #tpu.pipeline_mode<synchronous>, transform_indices = @transform_3, window_bounds = array<i64: 128, 128>}, {pipeline_mode = #tpu.pipeline_mode<synchronous>, transform_indices = @transform_4, window_bounds = array<i64: 1, 128>}, {transform_indices = @transform_5, window_bounds = array<i64: 32, 128>}]} {
    %c0 = arith.constant 0 : index
    %c0_0 = arith.constant 0 : index
    %0 = vector.load %arg1[%c0, %c0_0] : memref<32x128xbf16, #tpu.memory_space<vmem>>, vector<32x128xbf16>
    %c0_1 = arith.constant 0 : index
    %c0_2 = arith.constant 0 : index
    %1 = vector.load %arg2[%c0_1, %c0_2] : memref<128x128xbf16, #tpu.memory_space<vmem>>, vector<128x128xbf16>
    %cst = arith.constant dense<0.000000e+00> : vector<32x128xf32>
    %2 = tpu.matmul %0, %1, %cst {dimension_numbers = #tpu.dot_dimension_numbers<[1], [0], [0], [1], [0, 0, 1, 1], [], []>} : vector<32x128xbf16>, vector<128x128xbf16>, vector<32x128xf32> -> vector<32x128xf32>
    %c0_3 = arith.constant 0 : index
    %c0_4 = arith.constant 0 : index
    %3 = vector.load %arg3[%c0_3, %c0_4] : memref<1x128xf32, #tpu.memory_space<vmem>>, vector<1x128xf32>
    %4 = vector.broadcast %3 : vector<1x128xf32> to vector<32x128xf32>
    %5 = arith.addf %2, %4 : vector<32x128xf32>
    %cst_5 = arith.constant 0.000000e+00 : f32
    %6 = vector.broadcast %cst_5 : f32 to vector<32x128xf32>
    %7 = arith.maximumf %5, %6 : vector<32x128xf32>
    %8 = arith.truncf %7 : vector<32x128xf32> to vector<32x128xbf16>
    %c0_6 = arith.constant 0 : index
    %c0_7 = arith.constant 0 : index
    %9 = vector.load %arg4[%c0_6, %c0_7] : memref<128x128xbf16, #tpu.memory_space<vmem>>, vector<128x128xbf16>
    %cst_8 = arith.constant dense<0.000000e+00> : vector<32x128xf32>
    %10 = tpu.matmul %8, %9, %cst_8 {dimension_numbers = #tpu.dot_dimension_numbers<[1], [0], [0], [1], [0, 0, 1, 1], [], []>} : vector<32x128xbf16>, vector<128x128xbf16>, vector<32x128xf32> -> vector<32x128xf32>
    %c0_9 = arith.constant 0 : index
    %c0_10 = arith.constant 0 : index
    %11 = vector.load %arg5[%c0_9, %c0_10] : memref<1x128xf32, #tpu.memory_space<vmem>>, vector<1x128xf32>
    %12 = vector.broadcast %11 : vector<1x128xf32> to vector<32x128xf32>
    %13 = arith.addf %10, %12 : vector<32x128xf32>
    %c0_11 = arith.constant 0 : index
    %c0_12 = arith.constant 0 : index
    %14 = vector.load %arg6[%c0_11, %c0_12] : memref<32x128xf32, #tpu.memory_space<vmem>>, vector<32x128xf32>
    tpu.vector_store %arg6[%c0_11, %c0_12], %13 {strides = array<i32>} : memref<32x128xf32, #tpu.memory_space<vmem>>, vector<32x128xf32>,
    return
  }
  func.func @transform_0(%arg0: i32) -> (i32, i32) {
    %c0_i32 = arith.constant 0 : i32
    %c0_i32_0 = arith.constant 0 : i32
    return %arg0, %c0_i32 : i32, i32
  }
  func.func @transform_1(%arg0: i32) -> (i32, i32) {
    %c0_i32 = arith.constant 0 : i32
    %c0_i32_0 = arith.constant 0 : i32
    %c0_i32_1 = arith.constant 0 : i32
    return %c0_i32, %c0_i32_0 : i32, i32
  }
  func.func @transform_2(%arg0: i32) -> (i32, i32) {
    %c0_i32 = arith.constant 0 : i32
    %c0_i32_0 = arith.constant 0 : i32
    %c0_i32_1 = arith.constant 0 : i32
    return %c0_i32, %c0_i32_0 : i32, i32
  }
  func.func @transform_3(%arg0: i32) -> (i32, i32) {
    %c0_i32 = arith.constant 0 : i32
    %c0_i32_0 = arith.constant 0 : i32
    %c0_i32_1 = arith.constant 0 : i32
    return %c0_i32, %c0_i32_0 : i32, i32
  }
  func.func @transform_4(%arg0: i32) -> (i32, i32) {
    %c0_i32 = arith.constant 0 : i32
    %c0_i32_0 = arith.constant 0 : i32
    %c0_i32_1 = arith.constant 0 : i32
    return %c0_i32, %c0_i32_0 : i32, i32
  }
  func.func @transform_5(%arg0: i32) -> (i32, i32) {
    %c0_i32 = arith.constant 0 : i32
    %c0_i32_0 = arith.constant 0 : i32
    return %arg0, %c0_i32 : i32, i32
  }
}

</mosaic_0001>

<bundles_post_ra>
// kernel: mlp_forward.1
= control target key start
LH: loop header
LB: loop body
LE: loop exit
PB: predicated region body
PF: predicated region fallthrough
CT: control target
= control target key end

     0   :  { %s706_s18 = smov 0   ;;  %s785_s0 = inlined_call_operand.vmem [shape: bf16[64,128], index: 0, kind: input, shape index: {}]   ;;  %s786_s1 = inlined_call_operand.vmem [shape: bf16[128,128], index: 1, kind: input, shape index: {}]   ;;  %s787_s2 = inlined_call_operand.vmem [shape: f32[1,128], index: 2, kind: input, shape index: {}]   ;;  %s788_s3 = inlined_call_operand.vmem [shape: bf16[128,128], index: 3, kind: input, shape index: {}]   ;;  %s789_s4 = inlined_call_operand.vmem [shape: f32[1,128], index: 4, kind: input, shape index: {}]   ;;  %s790_s5 = inlined_call_operand.vmem [shape: f32[64,128], index: 5, kind: output, shape index: {}]  }
   0x1 LB: > { %s551_s19 = sadd.s32 4294967295, %s674_s18   ;;  %p555_p0 = scmp.ge.s32.totalorder %s674_s18, 1  ;;  %s674_s18 = sphi %s706_s18, %s15_s18  }
   0x2   : > { %p188_p1 = scmp.lt.s32.totalorder %s674_s18, 3 }
   0x4   : > { %p189_p2 = pnand %p555_p0, %p188_p1 }
   0x5   : > { %s556_s22 = sshll.u32 (!%p189_p2), %s551_s19, 2 }
   0x6   : > { %192 = sbr.rel (%p189_p2) target bundleno = 452 (0x1c4), region = 40  ;;  %p217_p3 = scmp.lt.s32.totalorder (!%p189_p2), %s556_s22, 7 }
   0xb   : > { %v650_v0 = vld [vmem:[%s786_s1 + $0x38] sm:$0xff]   ;;  %v651_v1 = vld [vmem:[%s786_s1 + $0x30] sm:$0xff]   ;;  %s792_s22 = smov (!%p217_p3, %s556_s22), 7  ;;  %v652_v2 = vld [vmem:[%s786_s1 + $0x28] sm:$0xff]  }
   0xc   : > { %602 = vmatprep.subr.bf16.mxu0 %v650_v0  ;;  %s557_s27 = sshll.u32 %s792_s22, 2  ;;  %v653_v3 = vld [vmem:[%s786_s1 + $0x20] sm:$0xff]   ;;  %v660_v5 = vld [vmem:[%s788_s3 + $0x38] sm:$0xff]   ;;  %v661_v6 = vld [vmem:[%s788_s3 + $0x30] sm:$0xff]   ;;  %s559_s11 = sshll.u32 %s792_s22, 3 }
   0xd   : > { %603 = vmatpush3.bf16.msra.mxu0 %v650_v0  ;;  %s729_s30 = scalar_lea.vmem %s785_s0, %s557_s27  ;;  %v654_v7 = vld [vmem:[%s786_s1 + $0x18] sm:$0xff]   ;;  %622 = vmatprep.subr.bf16.mxu1 %v660_v5  ;;  %v655_v8 = vld [vmem:[%s786_s1 + $0x10] sm:$0xff]   ;;  %v662_v9 = vld [vmem:[%s788_s3 + $0x28] sm:$0xff]   ;;  %s226_s16 = scalar_lea.vmem %s790_s5, %s559_s11 }
   0xe   : > { %604 = vmatprep.subr.bf16.mxu0 %v651_v1  ;;  %v658_v4 = vld [vmem:[%s729_s30] sm:$0xff]   ;;  %623 = vmatpush3.bf16.msra.mxu1 %v660_v5  ;;  %v656_v11 = vld [vmem:[%s786_s1 + $0x8] sm:$0xff]   ;;  %v664_v12 = vld [vmem:[%s788_s3 + $0x18] sm:$0xff]  }
   0xf   : > { %618 = vmatprep.mubr.bf16.mxu0 %v658_v4  ;;  %624 = vmatprep.subr.bf16.mxu1 %v661_v6  ;;  %v663_v10 = vld [vmem:[%s788_s3 + $0x20] sm:$0xff]   ;;  %v659_v14 = vld [vmem:[%s729_s30 + $0x8] sm:$0xff]   ;;  %v665_v15 = vld [vmem:[%s788_s3 + $0x10] sm:$0xff]  }
  0x10   : > { %v657_v13 = vld [vmem:[%s786_s1] sm:$0xff]   ;;  %v666_v16 = vld [vmem:[%s788_s3 + $0x8] sm:$0xff]  }
  0x11   : > { %605 = vmatpush3.bf16.msra.mxu0 %v651_v1  ;;  %v667_v17 = vld [vmem:[%s788_s3] sm:$0xff]  }
  0x12   : > { %606 = vmatprep.subr.bf16.mxu0 %v652_v2  ;;  %625 = vmatpush3.bf16.msra.mxu1 %v661_v6  ;;  %v560_v20 = vld [vmem:[%s787_s2] ss:$0 sm:$0xff] }
  0x13   : > { %626 = vmatprep.subr.bf16.mxu1 %v662_v9  ;;  %v571_v34 = vld [vmem:[%s789_s4] ss:$0 sm:$0xff] }
  0x15   : > { %607 = vmatpush3.bf16.msra.mxu0 %v652_v2 }
  0x16   : > { %608 = vmatprep.subr.bf16.mxu0 %v653_v3  ;;  %627 = vmatpush3.bf16.msra.mxu1 %v662_v9 }
  0x17   : > { %628 = vmatprep.subr.bf16.mxu1 %v663_v10 }
  0x19   : > { %609 = vmatpush3.bf16.msra.mxu0 %v653_v3 }
  0x1a   : > { %610 = vmatprep.subr.bf16.mxu0 %v654_v7  ;;  %629 = vmatpush3.bf16.msra.mxu1 %v663_v10 }
  0x1b   : > { %630 = vmatprep.subr.bf16.mxu1 %v664_v12 }
  0x1d   : > { %611 = vmatpush3.bf16.msra.mxu0 %v654_v7 }
  0x1e   : > { %612 = vmatprep.subr.bf16.mxu0 %v655_v8  ;;  %631 = vmatpush3.bf16.msra.mxu1 %v664_v12 }
  0x1f   : > { %632 = vmatprep.subr.bf16.mxu1 %v665_v15 }
  0x21   : > { %613 = vmatpush3.bf16.msra.mxu0 %v655_v8 }
  0x22   : > { %614 = vmatprep.subr.bf16.mxu0 %v656_v11  ;;  %633 = vmatpush3.bf16.msra.mxu1 %v665_v15 }
  0x23   : > { %634 = vmatprep.subr.bf16.mxu1 %v666_v16 }
  0x25   : > { %615 = vmatpush3.bf16.msra.mxu0 %v656_v11 }
  0x26   : > { %616 = vmatprep.subr.bf16.mxu0 %v657_v13  ;;  %635 = vmatpush3.bf16.msra.mxu1 %v666_v16 }
  0x27   : > { %636 = vmatprep.subr.bf16.mxu1 %v667_v17 }
  0x29   : > { %617 = vmatpush3.bf16.msra.mxu0 %v657_v13 }
  0x2a   : > { %637 = vmatpush3.bf16.msra.mxu1 %v667_v17 }
  0x2c   : > { %619 = vmatmul.mubr.bf16.vlgmr.msra.gmra.mxu0 %v659_v14 }
  0xec   : > { %v620_v18 = vpop.f32.mrf.mxu0 }
  0xed   : > { %v359_v24 = vadd.f32 %v620_v18, %v560_v20 }
  0xee   : > { %v350_v19 = vpop.f32.mrf.mxu0 }
  0xef   : > { %v351_v22 = vadd.f32 %v560_v20, %v350_v19  ;;  %v367_v30 = vmax.f32 %v359_v24, 0.0 }
  0xf0   : > { %v621_v21 = vpop.f32.mrf.mxu0 }
  0xf1   : > { %v362_v23 = vadd.f32 %v621_v21, %v560_v20  ;;  %v365_v28 = vmax.f32 %v351_v22, 0.0 }
  0xf2   : > { %v353_v25 = vpop.f32.mrf.mxu0 }
  0xf3   : > { %v354_v26 = vadd.f32 %v560_v20, %v353_v25  ;;  %v368_v27 = vmax.f32 %v362_v23, 0.0 }
  0xf5   : > { %v366_v29 = vmax.f32 %v354_v26, 0.0  ;;  %v370_v32 = vpack.c.bf16 %v368_v27, %v367_v30 }
  0xf7   : > { %v369_v31 = vpack.c.bf16 %v366_v29, %v365_v28 }
  0xf9   : > { %638 = vmatprep.mubr.bf16.mxu1 %v369_v31 }
  0xfa   : > { %639 = vmatmul.mubr.bf16.vlgmr.msra.gmra.mxu1 %v370_v32 }
 0x1ba   : > { %v640_v33 = vpop.f32.mrf.mxu1 }
 0x1bb   : > { %v485_v40 = vadd.f32 %v640_v33, %v571_v34 }
 0x1bc   : > { %v476_v35 = vpop.f32.mrf.mxu1 }
 0x1bd   : > { %v477_v36 = vadd.f32 %v571_v34, %v476_v35  ;;  %493 = vst [vmem:[%s226_s16 + $0x10] sm:$0xff] %v485_v40 }
 0x1be   : > { %v641_v37 = vpop.f32.mrf.mxu1 }
 0x1bf   : > { %491 = vst [vmem:[%s226_s16] sm:$0xff] %v477_v36  ;;  %v488_v41 = vadd.f32 %v641_v37, %v571_v34 }
 0x1c0   : > { %v479_v38 = vpop.f32.mrf.mxu1 }
 0x1c1   : > { %v480_v39 = vadd.f32 %v571_v34, %v479_v38  ;;  %494 = vst [vmem:[%s226_s16 + $0x18] sm:$0xff] %v488_v41 }
 0x1c3   : > { %492 = vst [vmem:[%s226_s16 + $0x8] sm:$0xff] %v480_v39 }
 0x1c4 PF: > { %s15_s18 = sadd.s32 1, %s674_s18  }
 0x1c5   : > { %p12_p4 = scmp.ge.s32.totalorder %s15_s18, 4  }
 0x1c7   :  { %14 = sbr.rel (!%p12_p4) target bundleno = 1 (0x1), region = 70 }

</bundles_post_ra>
